<compile_context>
chip_gen: v7x
topology: tpu7x:2x2x1
jax: 0.10.0
libtpu: 0.0.40
codegen_flags: <defaults>
</compile_context>

<pallas_src>
from functools import partial

import jax
import jax.numpy as jnp
from jax.experimental import pallas as pl
from jax.experimental.pallas import tpu as pltpu


def _residual_ln_kernel(x_ref, sub_ref, alpha_ref, bias_ref, out_ref, *, eps, dropout_p):
    # x_ref, sub_ref, out_ref: (TOK_TILE, D)
    # alpha_ref, bias_ref:     (1, D)  (broadcast over rows)
    x = x_ref[...].astype(jnp.float32)
    s = sub_ref[...].astype(jnp.float32)

    # nn.Dropout in eval mode is the identity; dropout_p kept for API parity.
    del dropout_p
    y = x + s

    mean = jnp.mean(y, axis=-1, keepdims=True)
    centered = y - mean
    var = jnp.mean(centered * centered, axis=-1, keepdims=True)   # biased, matches .mean()
    inv = jax.lax.rsqrt(var + eps)                                # EUP

    out = alpha_ref[...] * (centered * inv) + bias_ref[...]
    out_ref[...] = out.astype(out_ref.dtype)


def residual_connection(x, sublayer_out, alpha, bias, *, eps=1e-6, dropout_p=0.0,
                        tok_tile=256):
    """Fused residual-add + LayerNorm.

    x:            (B, S, D) f32   residual stream
    sublayer_out: (B, S, D) f32   sublayer(x), computed outside the kernel
    alpha, bias:  (D,)      f32   LayerNorm scale / shift
    returns       (B, S, D) f32
    """
    B, S, D = x.shape
    n_tok = B * S

    x2 = x.reshape(n_tok, D)
    s2 = sublayer_out.reshape(n_tok, D)

    # Sublane-aligned token tile, capped by the (padded) token count.
    tile = min(tok_tile, pl.cdiv(n_tok, 8) * 8)
    n_pad = pl.cdiv(n_tok, tile) * tile
    if n_pad != n_tok:
        pad = n_pad - n_tok
        x2 = jnp.pad(x2, ((0, pad), (0, 0)))
        s2 = jnp.pad(s2, ((0, pad), (0, 0)))

    alpha2 = alpha.reshape(1, D).astype(jnp.float32)
    bias2 = bias.reshape(1, D).astype(jnp.float32)

    out_flat = pl.pallas_call(
        partial(_residual_ln_kernel, eps=float(eps), dropout_p=float(dropout_p)),
        out_shape=jax.ShapeDtypeStruct((n_pad, D), jnp.float32),
        grid_spec=pltpu.PrefetchScalarGridSpec(
            num_scalar_prefetch=0,
            grid=(n_pad // tile,),
            in_specs=[
                pl.BlockSpec((tile, D), lambda i: (i, 0)),   # x tile
                pl.BlockSpec((tile, D), lambda i: (i, 0)),   # sublayer(x) tile
                pl.BlockSpec((1, D), lambda i: (0, 0)),      # alpha (invariant)
                pl.BlockSpec((1, D), lambda i: (0, 0)),      # bias  (invariant)
            ],
            out_specs=pl.BlockSpec((tile, D), lambda i: (i, 0)),
        ),
        compiler_params=pltpu.CompilerParams(
            dimension_semantics=("parallel",),               # shards tokens over v7x's 2 TCs
            vmem_limit_bytes=64 * 1024 * 1024,
        ),
    )(x2, s2, alpha2, bias2)

    return out_flat[:n_tok].reshape(B, S, D)


if __name__ == "__main__":
    batch, seq, d_model = 2, 8, 128   # lane-dense last dim (multiple of 128)
    eps = 1e-6

    key = jax.random.PRNGKey(0)
    k_x, k_w, k_a, k_b = jax.random.split(key, 4)

    x = jax.random.normal(k_x, (batch, seq, d_model), dtype=jnp.float32)

    # A simple deterministic "sublayer" (computed outside the kernel, as in the module,
    # where `sublayer` is an arbitrary nn.Module passed into forward()).
    w = jax.random.normal(k_w, (d_model, d_model), dtype=jnp.float32) / jnp.sqrt(d_model)
    sublayer = lambda t: jnp.tanh(t @ w)
    sub = sublayer(x)

    # LayerNormalization params (init is ones/zeros; perturb to exercise the math).
    alpha = 1.0 + 0.1 * jax.random.normal(k_a, (d_model,), dtype=jnp.float32)
    bias = 0.1 * jax.random.normal(k_b, (d_model,), dtype=jnp.float32)

    out = residual_connection(x, sub, alpha, bias, eps=eps, dropout_p=0.1)
    out = jax.block_until_ready(out)

    # Reference: norm(x + dropout(sublayer(x))) with dropout in eval mode (identity).
    y = x + sub
    mean = y.mean(axis=2, keepdims=True)
    var = ((y - mean) ** 2).mean(axis=2, keepdims=True)
    ref = alpha * (y - mean) / jnp.sqrt(var + eps) + bias

    assert out.shape == (batch, seq, d_model)
    assert jnp.allclose(out, ref, atol=1e-5, rtol=1e-5)

    print("KERNEL_OK")
</pallas_src>

<mosaic_0001>
module attributes {stable_mosaic.version = 11 : i64} {
  func.func @_residual_ln_kernel(%arg0: i32, %arg1: memref<16x128xf32, #tpu.memory_space<vmem>>, %arg2: memref<16x128xf32, #tpu.memory_space<vmem>>, %arg3: memref<1x128xf32, #tpu.memory_space<vmem>>, %arg4: memref<1x128xf32, #tpu.memory_space<vmem>>, %arg5: memref<16x128xf32, #tpu.memory_space<vmem>>) attributes {dimension_semantics = [#tpu.dimension_semantics<parallel>], iteration_bounds = array<i64: 1>, scalar_prefetch = 0 : i64, scratch_operands = 0 : i64, tpu.core_type = #tpu.core_type<tc>, window_params = [{transform_indices = @transform_0, window_bounds = array<i64: 16, 128>}, {transform_indices = @transform_1, window_bounds = array<i64: 16, 128>}, {pipeline_mode = #tpu.pipeline_mode<synchronous>, transform_indices = @transform_2, window_bounds = array<i64: 1, 128>}, {pipeline_mode = #tpu.pipeline_mode<synchronous>, transform_indices = @transform_3, window_bounds = array<i64: 1, 128>}, {transform_indices = @transform_4, window_bounds = array<i64: 16, 128>}]} {
    %c0 = arith.constant 0 : index
    %c0_0 = arith.constant 0 : index
    %0 = vector.load %arg1[%c0, %c0_0] : memref<16x128xf32, #tpu.memory_space<vmem>>, vector<16x128xf32>
    %c0_1 = arith.constant 0 : index
    %c0_2 = arith.constant 0 : index
    %1 = vector.load %arg2[%c0_1, %c0_2] : memref<16x128xf32, #tpu.memory_space<vmem>>, vector<16x128xf32>
    %2 = arith.addf %0, %1 : vector<16x128xf32>
    %cst = arith.constant dense<0.000000e+00> : vector<16xf32>
    %3 = vector.multi_reduction <add>, %2, %cst [1] : vector<16x128xf32> to vector<16xf32>
    %4 = vector.shape_cast %3 : vector<16xf32> to vector<16x1xf32>
    %cst_3 = arith.constant 1.280000e+02 : f32
    %5 = vector.broadcast %cst_3 : f32 to vector<16x1xf32>
    %6 = arith.divf %4, %5 : vector<16x1xf32>
    %7 = vector.broadcast %6 : vector<16x1xf32> to vector<16x128xf32>
    %8 = arith.subf %2, %7 : vector<16x128xf32>
    %9 = arith.mulf %8, %8 : vector<16x128xf32>
    %cst_4 = arith.constant dense<0.000000e+00> : vector<16xf32>
    %10 = vector.multi_reduction <add>, %9, %cst_4 [1] : vector<16x128xf32> to vector<16xf32>
    %11 = vector.shape_cast %10 : vector<16xf32> to vector<16x1xf32>
    %cst_5 = arith.constant 1.280000e+02 : f32
    %12 = vector.broadcast %cst_5 : f32 to vector<16x1xf32>
    %13 = arith.divf %11, %12 : vector<16x1xf32>
    %cst_6 = arith.constant 9.99999997E-7 : f32
    %14 = vector.broadcast %cst_6 : f32 to vector<16x1xf32>
    %15 = arith.addf %13, %14 : vector<16x1xf32>
    %16 = math.rsqrt %15 : vector<16x1xf32>
    %c0_7 = arith.constant 0 : index
    %c0_8 = arith.constant 0 : index
    %17 = vector.load %arg3[%c0_7, %c0_8] : memref<1x128xf32, #tpu.memory_space<vmem>>, vector<1x128xf32>
    %18 = vector.broadcast %16 : vector<16x1xf32> to vector<16x128xf32>
    %19 = arith.mulf %8, %18 : vector<16x128xf32>
    %20 = vector.broadcast %17 : vector<1x128xf32> to vector<16x128xf32>
    %21 = arith.mulf %20, %19 : vector<16x128xf32>
    %c0_9 = arith.constant 0 : index
    %c0_10 = arith.constant 0 : index
    %22 = vector.load %arg4[%c0_9, %c0_10] : memref<1x128xf32, #tpu.memory_space<vmem>>, vector<1x128xf32>
    %23 = vector.broadcast %22 : vector<1x128xf32> to vector<16x128xf32>
    %24 = arith.addf %21, %23 : vector<16x128xf32>
    %c0_11 = arith.constant 0 : index
    %c0_12 = arith.constant 0 : index
    %25 = vector.load %arg5[%c0_11, %c0_12] : memref<16x128xf32, #tpu.memory_space<vmem>>, vector<16x128xf32>
    tpu.vector_store %arg5[%c0_11, %c0_12], %24 {strides = array<i32>} : memref<16x128xf32, #tpu.memory_space<vmem>>, vector<16x128xf32>,
    return
  }
  func.func @transform_0(%arg0: i32) -> (i32, i32) {
    %c0_i32 = arith.constant 0 : i32
    %c0_i32_0 = arith.constant 0 : i32
    return %arg0, %c0_i32 : i32, i32
  }
  func.func @transform_1(%arg0: i32) -> (i32, i32) {
    %c0_i32 = arith.constant 0 : i32
    %c0_i32_0 = arith.constant 0 : i32
    return %arg0, %c0_i32 : i32, i32
  }
  func.func @transform_2(%arg0: i32) -> (i32, i32) {
    %c0_i32 = arith.constant 0 : i32
    %c0_i32_0 = arith.constant 0 : i32
    %c0_i32_1 = arith.constant 0 : i32
    return %c0_i32, %c0_i32_0 : i32, i32
  }
  func.func @transform_3(%arg0: i32) -> (i32, i32) {
    %c0_i32 = arith.constant 0 : i32
    %c0_i32_0 = arith.constant 0 : i32
    %c0_i32_1 = arith.constant 0 : i32
    return %c0_i32, %c0_i32_0 : i32, i32
  }
  func.func @transform_4(%arg0: i32) -> (i32, i32) {
    %c0_i32 = arith.constant 0 : i32
    %c0_i32_0 = arith.constant 0 : i32
    return %arg0, %c0_i32 : i32, i32
  }
}

</mosaic_0001>

<bundles_post_ra>
// kernel: tpu_custom_call.1
= control target key start
LH: loop header
LB: loop body
LE: loop exit
PB: predicated region body
PF: predicated region fallthrough
CT: control target
= control target key end

     0   :  { %9 = vsyncpa [#allocation3], 0  ;;  %s376_s0 = inlined_call_operand.hbm [shape: f32[16,128], index: 0, kind: input, shape index: {}]   ;;  %s377_s1 = inlined_call_operand.hbm [shape: f32[16,128], index: 1, kind: input, shape index: {}]   ;;  %s378_s2 = inlined_call_operand.hbm [shape: f32[1,128], index: 2, kind: input, shape index: {}]   ;;  %s379_s3 = inlined_call_operand.hbm [shape: f32[1,128], index: 3, kind: input, shape index: {}]   ;;  %s380_s4 = inlined_call_operand.hbm [shape: f32[16,128], index: 4, kind: output, shape index: {}]  }
   0x1   :  { %10 = vsyncpa [#allocation6], 0 }
   0x2   :  { %11 = vsyncpa [#allocation9], 0 }
   0x3   :  { %12 = vsyncpa [#allocation4], 0  ;;  %s268_s15 = smov [#allocation5]   ;;  %s269_s17 = smov [#allocation2]  }
   0x4   :  { %s30_s16 = sshll.u32 %s268_s15, 4  ;;  %s18_s18 = sshll.u32 %s269_s17, 4  ;;  %s31_s16 = int_to_ptr.vmem [resolvable:$true] %s30_s16  ;;  %s300_s18 = int_to_ptr.vmem [resolvable:$true] %s18_s18 }
   0x5   :  { %s150_s21 = scalar_lea.hbm %s377_s1, 256 }
   0x6   :  { %p151_p0 = scmp.ne.s32.totalorder %s377_s1, %s150_s21  ;;  %p154_p1 = scmp.lt.u32.totalorder %s150_s21, %s377_s1 }
   0x8   :  { %p156_p2 = pnand %p154_p1, %p151_p0 }
   0xa   :  { %159 = shalt.err (!%p156_p2)
}
   0xb   :  { %s160_s26 = scalar_lea.vmem %s31_s16, 256  ;;  %p165_p4 = scmp.lt.s32.totalorder %s31_s16, %s31_s16 }
   0xc   :  { %p161_p3 = scmp.ne.s32.totalorder %s31_s16, %s160_s26  ;;  %p166_p5 = scmp.lt.s32.totalorder %s160_s26, %s160_s26 }
   0xe   :  { %p167_p6 = por %p166_p5, %p165_p4 }
  0x10   :  { %p168_p7 = pnand %p167_p6, %p161_p3 }
  0x12   :  { %171 = shalt.err (!%p168_p7)
}
  0x13   :  { %s270_s27 = smov 128   ;;  %s271_s28 = smov 8  }
  0x14   :  { %36 = dma.hbm_to_vmem [thread:$0]  %s377_s1, 256, %s31_s16, [#allocation6], %s270_s27, %s270_s27, %s271_s28  }
  0x15   :  { %s172_s7 = scalar_lea.hbm %s376_s0, 256 }
  0x16   :  { %p173_p8 = scmp.ne.s32.totalorder %s376_s0, %s172_s7  ;;  %p176_p9 = scmp.lt.u32.totalorder %s172_s7, %s376_s0 }
  0x18   :  { %p178_p10 = pnand %p176_p9, %p173_p8 }
  0x1a   :  { %181 = shalt.err (!%p178_p10)
}
  0x1b   :  { %s182_s12 = scalar_lea.vmem %s300_s18, 256  ;;  %p187_p12 = scmp.lt.s32.totalorder %s300_s18, %s300_s18 }
  0x1c   :  { %p183_p11 = scmp.ne.s32.totalorder %s300_s18, %s182_s12  ;;  %p188_p13 = scmp.lt.s32.totalorder %s182_s12, %s182_s12 }
  0x1e   :  { %p189_p0 = por %p188_p13, %p187_p12 }
  0x20   :  { %p190_p1 = pnand %p189_p0, %p183_p11 }
  0x22   :  { %193 = shalt.err (!%p190_p1)
}
  0x23   :  { %24 = dma.hbm_to_vmem [thread:$0]  %s376_s0, 256, %s300_s18, [#allocation3], %s270_s27, %s270_s27, %s271_s28  }
  0x24   :  { %s272_s14 = smov [#allocation7]   ;;  %s273_s16 = smov [#allocation8]  }
  0x25   :  { %s43_s15 = sshll.u32 %s272_s14, 4  ;;  %s53_s17 = sshll.u32 %s273_s16, 4  ;;  %s44_s15 = int_to_ptr.vmem [resolvable:$true] %s43_s15  ;;  %s54_s17 = int_to_ptr.vmem [resolvable:$true] %s53_s17 }
  0x26   :  { %s194_s21 = scalar_lea.hbm %s378_s2, 16 }
  0x27   :  { %p195_p2 = scmp.ne.s32.totalorder %s378_s2, %s194_s21  ;;  %p198_p3 = scmp.lt.u32.totalorder %s194_s21, %s378_s2 }
  0x29   :  { %p200_p4 = pnand %p198_p3, %p195_p2 }
  0x2b   :  { %203 = shalt.err (!%p200_p4)
}
  0x2c   :  { %s204_s0 = scalar_lea.vmem %s44_s15, 16  ;;  %s208_s18 = scalar_lea.vmem %s44_s15, 32 }
  0x2d   :  { %p205_p5 = scmp.ne.s32.totalorder %s44_s15, %s204_s0  ;;  %p209_p6 = scmp.lt.s32.totalorder %s44_s15, %s44_s15 }
  0x2e   :  { %p210_p7 = scmp.lt.s32.totalorder %s208_s18, %s204_s0 }
  0x30   :  { %p211_p8 = por %p210_p7, %p209_p6 }
  0x32   :  { %p212_p9 = pnand %p211_p8, %p205_p5 }
  0x34   :  { %215 = shalt.err (!%p212_p9)
}
  0x35   :  { %46 = dma.hbm_to_vmem [thread:$0]  %s378_s2, 16, %s44_s15, [#allocation6]  }
  0x36   :  { %s216_s6 = scalar_lea.hbm %s379_s3, 16 }
  0x37   :  { %p217_p10 = scmp.ne.s32.totalorder %s379_s3, %s216_s6  ;;  %p220_p11 = scmp.lt.u32.totalorder %s216_s6, %s379_s3 }
  0x39   :  { %p222_p12 = pnand %p220_p11, %p217_p10 }
  0x3b   :  { %225 = shalt.err (!%p222_p12)
}
  0x3c   :  { %s226_s11 = scalar_lea.vmem %s54_s17, 16  ;;  %s230_s12 = scalar_lea.vmem %s54_s17, 32 }
  0x3d   :  { %p227_p13 = scmp.ne.s32.totalorder %s54_s17, %s226_s11  ;;  %p231_p0 = scmp.lt.s32.totalorder %s54_s17, %s54_s17 }
  0x3e   :  { %p232_p1 = scmp.lt.s32.totalorder %s230_s12, %s226_s11 }
  0x40   :  { %p233_p2 = por %p232_p1, %p231_p0 }
  0x42   :  { %p234_p3 = pnand %p233_p2, %p227_p13 }
  0x44   :  { %237 = shalt.err (!%p234_p3)
}
  0x45   :  { %56 = dma.hbm_to_vmem [thread:$0]  %s379_s3, 16, %s54_s17, [#allocation9]  }
  0x46   :  { %260 = dma.done.wait [#allocation3], 256  }
  0x47   :  { %261 = vsyncadd [#allocation3], 4294967040 }
  0x48   :  { %262 = dma.done.wait [#allocation6], 272  }
  0x49   :  { %263 = vsyncadd [#allocation6], 4294967024 }
  0x4a   :  { %264 = dma.done.wait [#allocation9], 16  }
  0x4b   :  { %265 = vsyncadd [#allocation9], 4294967280  ;;  %v69_v0 = vld [vmem:[#allocation2] sm:$0xff]  ;;  %v71_v1 = vld [vmem:[#allocation5] sm:$0xff]  ;;  %s274_s3 = smov [#allocation10]  }
  0x4c   :  { %v70_v2 = vld [vmem:[#allocation2 + $0x8] sm:$0xff]  ;;  %v73_v3 = vadd.f32 %v71_v1, %v69_v0  ;;  %v72_v4 = vld [vmem:[#allocation5 + $0x8] sm:$0xff]  ;;  %v137_v21 = vld [vmem:[#allocation7] ss:$0 sm:$0xff]  ;;  %s123_s13 = sshll.u32 %s274_s3, 4  ;;  %s124_s13 = int_to_ptr.vmem [resolvable:$true] %s123_s13 }
  0x4d   :  { %v74_v5 = vadd.f32 %v72_v4, %v70_v2  ;;  %v138_v23 = vld [vmem:[#allocation8] ss:$0 sm:$0xff]  ;;  %s238_s14 = scalar_lea.vmem %s124_s13, 256  ;;  %p243_p5 = scmp.lt.s32.totalorder %s124_s13, %s124_s13 }
  0x4e   :  { %75 = vadd.xlane.f32.xlu0 %v73_v3  ;;  %p239_p4 = scmp.ne.s32.totalorder %s124_s13, %s238_s14  ;;  %p244_p6 = scmp.lt.s32.totalorder %s238_s14, %s238_s14 }
  0x50   :  { %p245_p7 = por %p244_p6, %p243_p5 }
  0x52   :  { %77 = vadd.xlane.f32.xlu0 %v74_v5  ;;  %p246_p8 = pnand %p245_p7, %p239_p4 }
  0xdb   :  { %v76_v6 = vpop.xlane.xlu0 %75 }
  0xdc   :  { %v80_v7 = vmul.f32 0.0078125, %v76_v6 }
  0xde   :  { %v82_v8 = vsub.f32 %v73_v3, %v80_v7 }
  0xdf   :  { %v78_v9 = vpop.xlane.xlu0 %77 }
  0xe0   :  { %v81_v10 = vmul.f32 0.0078125, %v78_v9  ;;  %v84_v11 = vmul.f32 %v82_v8, %v82_v8 }
  0xe2   :  { %v83_v12 = vsub.f32 %v74_v5, %v81_v10  ;;  %86 = vadd.xlane.f32.xlu1 %v84_v11 }
  0xe4   :  { %v85_v13 = vmul.f32 %v83_v12, %v83_v12 }
  0xe6   :  { %88 = vadd.xlane.f32.xlu1 %v85_v13 }
 0x16f   :  { %v87_v14 = vpop.xlane.xlu1 %86 }
 0x170   :  { %v90_v15 = vmul.f32 0.0078125, %v87_v14 }
 0x172   :  { %v92_v16 = vadd.f32 1e-06, %v90_v15 }
 0x173   :  { %v89_v17 = vpop.xlane.xlu1 %88 }
 0x174   :  { %146 = vrsqrt.f32 %v92_v16  ;;  %v91_v18 = vmul.f32 0.0078125, %v89_v17 }
 0x176   :  { %v93_v19 = vadd.f32 1e-06, %v91_v18 }
 0x178   :  { %148 = vrsqrt.f32 %v93_v19 }
 0x17e   :  { %v147_v20 = vpop.eup %146 }
 0x17f   :  { %v97_v22 = vmul.f32 %v147_v20, %v82_v8 }
 0x181   :  { %v105_v24 = vmul.f32 %v137_v21, %v97_v22 }
 0x182   :  { %v149_v25 = vpop.eup %148 }
 0x183   :  { %v98_v26 = vmul.f32 %v149_v25, %v83_v12  ;;  %v114_v27 = vadd.f32 %v138_v23, %v105_v24 }
 0x185   :  { %v106_v28 = vmul.f32 %v137_v21, %v98_v26  ;;  %116 = vst [vmem:[#allocation10] sm:$0xff] %v114_v27 }
 0x187   :  { %v115_v29 = vadd.f32 %v138_v23, %v106_v28 }
 0x189   :  { %117 = vst [vmem:[#allocation10 + $0x8] sm:$0xff] %v115_v29 }
 0x18a   :  { %249 = shalt.err (!%p246_p8)
}
 0x18b   :  { %s250_s17 = scalar_lea.hbm %s380_s4, 256 }
 0x18c   :  { %p251_p9 = scmp.ne.s32.totalorder %s380_s4, %s250_s17  ;;  %p254_p10 = scmp.lt.u32.totalorder %s250_s17, %s380_s4 }
 0x18e   :  { %p256_p11 = pnand %p254_p10, %p251_p9 }
 0x190   :  { %259 = shalt.err (!%p256_p11)
}
 0x191   :  { %129 = dma.vmem_to_hbm [thread:$0]  %s124_s13, 256, %s380_s4, [#allocation4], %s270_s27, %s270_s27, %s271_s28  }
 0x192   :  { %266 = dma.done.wait [#allocation4], 256  }
 0x193   :  { %267 = vsyncadd [#allocation4], 4294967040 }
 0x194   :  { %133 = vsyncpa [#allocation3], 1 }
 0x195   :  { %134 = vsyncpa [#allocation6], 1 }
 0x196   :  { %135 = vsyncpa [#allocation9], 1 }
 0x197   :  { %136 = vsyncpa [#allocation4], 1 }

</bundles_post_ra>
